<compile_context>
chip_gen: v7x
topology: tpu7x:2x2x1
jax: 0.10.0
libtpu: 0.0.40
codegen_flags: <defaults>
</compile_context>

<pallas_src>
import jax
import jax.numpy as jnp
from jax.experimental import pallas as pl
from jax.experimental.pallas import tpu as pltpu


def fused_mlp_kernel(x_ref, w1_ref, w2_ref, b2_ref, o_ref):
    # layer1: (B, in) @ (in, hidden) -> (B, hidden).  Weights arrive pre-transposed
    # (MXU-native (M,K)x(K,N)); layer1 bias intentionally omitted to match the
    # Triton kernel.  f32 accumulate.
    h = jnp.dot(x_ref[...], w1_ref[...], preferred_element_type=jnp.float32)
    h = jnp.maximum(h, 0.0)  # ReLU

    # layer2: (B, hidden) @ (hidden, out) + bias (broadcast over batch).
    o_ref[...] = (
        jnp.dot(h, w2_ref[...], preferred_element_type=jnp.float32) + b2_ref[...]
    )


def prepare_params(w1, w2, b2, weights_dtype=jnp.float32):
    """One-time parameter prep — call at load time, NOT per forward call.

    Inputs use torch.nn.Linear layouts:
      w1: (hidden, in_features)   -- layer1.weight (layer1.bias unused: Triton kernel skips it)
      w2: (out_features, hidden)  -- layer2.weight
      b2: (out_features,)         -- layer2.bias
    Returns MXU-native layouts:
      w1_t: (in_features, hidden), w2_t: (hidden, out_features), b2_2d: (1, out_features)
    weights_dtype=jnp.bfloat16 halves the dominant w1 HBM traffic (~1e-2 rel err; gate on tolerance).
    """
    w1_t = jnp.asarray(w1).T.astype(weights_dtype)
    w2_t = jnp.asarray(w2).T.astype(weights_dtype)
    b2_2d = jnp.asarray(b2).reshape(1, -1).astype(jnp.float32)
    return w1_t, w2_t, b2_2d


def _forward_impl(x, w1_t, w2_t, b2_2d):
    """x: (B, C, H, W) or (B, in_features) float32; weights from prepare_params."""
    if x.ndim > 2:
        x = x.reshape(x.shape[0], -1)
    B, in_features = x.shape
    hidden = w1_t.shape[1]
    out_features = w2_t.shape[1]

    flops = 2 * B * in_features * hidden + 2 * B * hidden * out_features
    bytes_accessed = (
        4 * B * in_features
        + w1_t.dtype.itemsize * in_features * hidden
        + w2_t.dtype.itemsize * hidden * out_features
        + 4 * out_features
        + 4 * B * out_features
    )

    vmem = pl.BlockSpec(memory_space=pltpu.MemorySpace.VMEM)
    return pl.pallas_call(
        fused_mlp_kernel,
        out_shape=jax.ShapeDtypeStruct((B, out_features), jnp.float32),
        in_specs=[vmem, vmem, vmem, vmem],
        out_specs=pl.BlockSpec(memory_space=pltpu.MemorySpace.VMEM),
        cost_estimate=pl.CostEstimate(
            flops=flops, transcendentals=0, bytes_accessed=bytes_accessed
        ),
    )(x, w1_t, w2_t, b2_2d)


# Single jit over flatten + pallas_call so dispatch/inter-op gaps are minimized.
triton_neural_network_forward = jax.jit(_forward_impl)


if __name__ == "__main__":
    # Small shapes consistent with the module: NCHW input flattened to in_features.
    B, C, H, W = 2, 4, 16, 16
    in_features = C * H * W            # 1024
    hidden_features = 32
    out_features = 16

    key = jax.random.PRNGKey(0)
    kx, k1, k2, kb = jax.random.split(key, 4)

    x = jax.random.normal(kx, (B, C, H, W), dtype=jnp.float32)
    # torch.nn.Linear layouts: weight=(out, in), bias=(out,)
    w1 = jax.random.normal(k1, (hidden_features, in_features), dtype=jnp.float32) * 0.02
    w2 = jax.random.normal(k2, (out_features, hidden_features), dtype=jnp.float32) * 0.02
    b2 = jax.random.normal(kb, (out_features,), dtype=jnp.float32) * 0.02

    # One-time parameter prep (hoisted transpose; free amortized over calls).
    w1_t, w2_t, b2_2d = prepare_params(w1, w2, b2, weights_dtype=jnp.float32)

    out = triton_neural_network_forward(x, w1_t, w2_t, b2_2d)
    out = jax.block_until_ready(out)

    # Pure-JAX reference for the exact module semantics (layer1 bias skipped).
    x_flat = x.reshape(B, -1)
    ref = jnp.maximum(x_flat @ w1.T, 0.0) @ w2.T + b2
    assert out.shape == (B, out_features)
    assert jnp.allclose(out, ref, atol=1e-4, rtol=1e-4), "mismatch vs reference"

    print("KERNEL_OK")
</pallas_src>

<mosaic_0001>
module attributes {stable_mosaic.version = 11 : i64} {
  func.func @fused_mlp_kernel(%arg0: memref<2x1024xf32, #tpu.memory_space<vmem>>, %arg1: memref<1024x32xf32, #tpu.memory_space<vmem>>, %arg2: memref<32x16xf32, #tpu.memory_space<vmem>>, %arg3: memref<1x16xf32, #tpu.memory_space<vmem>>, %arg4: memref<2x16xf32, #tpu.memory_space<vmem>>) attributes {dimension_semantics = [], scalar_prefetch = 0 : i64, scratch_operands = 0 : i64, tpu.core_type = #tpu.core_type<tc>} {
    %c0 = arith.constant 0 : index
    %c0_0 = arith.constant 0 : index
    %0 = vector.load %arg0[%c0, %c0_0] : memref<2x1024xf32, #tpu.memory_space<vmem>>, vector<2x1024xf32>
    %c0_1 = arith.constant 0 : index
    %c0_2 = arith.constant 0 : index
    %1 = vector.load %arg1[%c0_1, %c0_2] : memref<1024x32xf32, #tpu.memory_space<vmem>>, vector<1024x32xf32>
    %cst = arith.constant dense<0.000000e+00> : vector<2x32xf32>
    %2 = tpu.matmul %0, %1, %cst {dimension_numbers = #tpu.dot_dimension_numbers<[1], [0], [0], [1], [0, 0, 1, 1], [], []>} : vector<2x1024xf32>, vector<1024x32xf32>, vector<2x32xf32> -> vector<2x32xf32>
    %cst_3 = arith.constant 0.000000e+00 : f32
    %3 = vector.broadcast %cst_3 : f32 to vector<2x32xf32>
    %4 = arith.maximumf %2, %3 : vector<2x32xf32>
    %c0_4 = arith.constant 0 : index
    %c0_5 = arith.constant 0 : index
    %5 = vector.load %arg2[%c0_4, %c0_5] : memref<32x16xf32, #tpu.memory_space<vmem>>, vector<32x16xf32>
    %cst_6 = arith.constant dense<0.000000e+00> : vector<2x16xf32>
    %6 = tpu.matmul %4, %5, %cst_6 {dimension_numbers = #tpu.dot_dimension_numbers<[1], [0], [0], [1], [0, 0, 1, 1], [], []>} : vector<2x32xf32>, vector<32x16xf32>, vector<2x16xf32> -> vector<2x16xf32>
    %c0_7 = arith.constant 0 : index
    %c0_8 = arith.constant 0 : index
    %7 = vector.load %arg3[%c0_7, %c0_8] : memref<1x16xf32, #tpu.memory_space<vmem>>, vector<1x16xf32>
    %8 = vector.broadcast %7 : vector<1x16xf32> to vector<2x16xf32>
    %9 = arith.addf %6, %8 : vector<2x16xf32>
    %c0_9 = arith.constant 0 : index
    %c0_10 = arith.constant 0 : index
    %10 = vector.load %arg4[%c0_9, %c0_10] : memref<2x16xf32, #tpu.memory_space<vmem>>, vector<2x16xf32>
    tpu.vector_store %arg4[%c0_9, %c0_10], %9 {strides = array<i32>} : memref<2x16xf32, #tpu.memory_space<vmem>>, vector<2x16xf32>,
    return
  }
}

</mosaic_0001>

<bundles_post_ra>
// kernel: _forward_impl.1
= control target key start
LH: loop header
LB: loop body
LE: loop exit
PB: predicated region body
PF: predicated region fallthrough
CT: control target
= control target key end

     0   :  { %v897_v47 = vmov 1983009808   ;;  %v154_v49 = vlaneseq  ;;  %s1355_s0 = inlined_call_operand.vmem [shape: f32[2,1024], index: 0, kind: input, shape index: {}]   ;;  %s1356_s1 = inlined_call_operand.vmem [shape: f32[1024,32], index: 1, kind: input, shape index: {}]   ;;  %s1357_s2 = inlined_call_operand.vmem [shape: f32[32,16], index: 2, kind: input, shape index: {}]   ;;  %s1358_s3 = inlined_call_operand.vmem [shape: f32[1,16], index: 3, kind: input, shape index: {}]   ;;  %s1359_s4 = inlined_call_operand.hbm [shape: f32[2,16], index: 4, kind: output, shape index: {}]  }
   0x1   :  { %v36_v0 = vld [vmem:[%s1356_s1 + $0x80] sm:$0xff]  ;;  %v37_v1 = vld [vmem:[%s1356_s1 + $0x88] sm:$0xff]  ;;  %v38_v11 = vld [vmem:[%s1356_s1 + $0x90] sm:$0xff]  ;;  %v152_v48 = vunpack.c.l.s4 %v897_v47 }
   0x2   :  { %v68_v2 = vld [vmem:[%s1356_s1 + $0x180] sm:$0xff]  ;;  %v732_v3 = vpack.c.bf16 %v37_v1, %v36_v0  ;;  %v69_v4 = vld [vmem:[%s1356_s1 + $0x188] sm:$0xff]  ;;  %v39_v13 = vld [vmem:[%s1356_s1 + $0x98] sm:$0xff]  ;;  %v155_v0 = vshrl.u32 %v154_v49, 7 }
   0x3   :  { %v20_v5 = vld [vmem:[%s1356_s1] sm:$0xff]  ;;  %v21_v6 = vld [vmem:[%s1356_s1 + $0x8] sm:$0xff]  ;;  %v764_v7 = vpack.c.bf16 %v69_v4, %v68_v2  ;;  %v70_v14 = vld [vmem:[%s1356_s1 + $0x190] sm:$0xff]  ;;  %v736_v16 = vpack.c.bf16 %v39_v13, %v38_v11  ;;  %v153_v63 = vunpack.c.0.s8 %v152_v48 }
   0x4   :  { %v734_v8 = vpack.c.bf16 %v21_v6, %v20_v5  ;;  %v52_v9 = vld [vmem:[%s1356_s1 + $0x100] sm:$0xff]  ;;  %v53_v10 = vld [vmem:[%s1356_s1 + $0x108] sm:$0xff]  ;;  %733 = vmatprep.subr.bf16.mxu0 %v732_v3  ;;  %v71_v15 = vld [vmem:[%s1356_s1 + $0x198] sm:$0xff] }
   0x5   :  { %v766_v12 = vpack.c.bf16 %v53_v10, %v52_v9  ;;  %765 = vmatprep.subr.bf16.mxu1 %v764_v7  ;;  %v768_v17 = vpack.c.bf16 %v71_v15, %v70_v14  ;;  %v22_v18 = vld [vmem:[%s1356_s1 + $0x10] sm:$0xff]  ;;  %v23_v19 = vld [vmem:[%s1356_s1 + $0x18] sm:$0xff]  ;;  %v40_v23 = vld [vmem:[%s1356_s1 + $0xa0] sm:$0xff]  ;;  %v1077_v13 = vsub.s32 %v153_v63, %v155_v0 }
   0x6   :  { %735 = vmatpush3.bf16.msra.mxu0 %v734_v8  ;;  %v54_v20 = vld [vmem:[%s1356_s1 + $0x110] sm:$0xff]  ;;  %v738_v21 = vpack.c.bf16 %v23_v19, %v22_v18  ;;  %v55_v22 = vld [vmem:[%s1356_s1 + $0x118] sm:$0xff]  ;;  %v41_v24 = vld [vmem:[%s1356_s1 + $0xa8] sm:$0xff] }
   0x7   :  { %767 = vmatpush3.bf16.msra.mxu1 %v766_v12  ;;  %737 = vmatprep.subr.bf16.mxu0 %v736_v16  ;;  %v770_v25 = vpack.c.bf16 %v55_v22, %v54_v20  ;;  %v740_v26 = vpack.c.bf16 %v41_v24, %v40_v23  ;;  %v72_v27 = vld [vmem:[%s1356_s1 + $0x1a0] sm:$0xff]  ;;  %v73_v28 = vld [vmem:[%s1356_s1 + $0x1a8] sm:$0xff]  ;;  %v42_v35 = vld [vmem:[%s1356_s1 + $0xb0] sm:$0xff] }
   0x8   :  { %769 = vmatprep.subr.bf16.mxu1 %v768_v17  ;;  %v24_v29 = vld [vmem:[%s1356_s1 + $0x20] sm:$0xff]  ;;  %v772_v30 = vpack.c.bf16 %v73_v28, %v72_v27  ;;  %v25_v31 = vld [vmem:[%s1356_s1 + $0x28] sm:$0xff]  ;;  %v43_v36 = vld [vmem:[%s1356_s1 + $0xb8] sm:$0xff] }
   0x9   :  { %v56_v32 = vld [vmem:[%s1356_s1 + $0x120] sm:$0xff]  ;;  %v57_v33 = vld [vmem:[%s1356_s1 + $0x128] sm:$0xff]  ;;  %v742_v34 = vpack.c.bf16 %v25_v31, %v24_v29  ;;  %v74_v37 = vld [vmem:[%s1356_s1 + $0x1b0] sm:$0xff]  ;;  %v744_v39 = vpack.c.bf16 %v43_v36, %v42_v35 }
   0xa   :  { %739 = vmatpush3.bf16.msra.mxu0 %v738_v21  ;;  %v774_v38 = vpack.c.bf16 %v57_v33, %v56_v32  ;;  %v75_v40 = vld [vmem:[%s1356_s1 + $0x1b8] sm:$0xff]  ;;  %v26_v41 = vld [vmem:[%s1356_s1 + $0x30] sm:$0xff]  ;;  %v44_v46 = vld [vmem:[%s1356_s1 + $0xc0] sm:$0xff] }
   0xb   :  { %771 = vmatpush3.bf16.msra.mxu1 %v770_v25  ;;  %741 = vmatprep.subr.bf16.mxu0 %v740_v26  ;;  %v27_v42 = vld [vmem:[%s1356_s1 + $0x38] sm:$0xff]  ;;  %v776_v43 = vpack.c.bf16 %v75_v40, %v74_v37  ;;  %v58_v44 = vld [vmem:[%s1356_s1 + $0x130] sm:$0xff]  ;;  %v45_v50 = vld [vmem:[%s1356_s1 + $0xc8] sm:$0xff] }
   0xc   :  { %773 = vmatprep.subr.bf16.mxu1 %v772_v30  ;;  %v59_v45 = vld [vmem:[%s1356_s1 + $0x138] sm:$0xff]  ;;  %v76_v51 = vld [vmem:[%s1356_s1 + $0x1c0] sm:$0xff]  ;;  %v77_v52 = vld [vmem:[%s1356_s1 + $0x1c8] sm:$0xff]  ;;  %v746_v53 = vpack.c.bf16 %v27_v42, %v26_v41  ;;  %v748_v55 = vpack.c.bf16 %v45_v50, %v44_v46 }
   0xd   :  { %v778_v54 = vpack.c.bf16 %v59_v45, %v58_v44  ;;  %v28_v56 = vld [vmem:[%s1356_s1 + $0x40] sm:$0xff]  ;;  %v29_v57 = vld [vmem:[%s1356_s1 + $0x48] sm:$0xff]  ;;  %v780_v59 = vpack.c.bf16 %v77_v52, %v76_v51  ;;  %v46_v61 = vld [vmem:[%s1356_s1 + $0xd0] sm:$0xff] }
   0xe   :  { %743 = vmatpush3.bf16.msra.mxu0 %v742_v34  ;;  %v60_v58 = vld [vmem:[%s1356_s1 + $0x140] sm:$0xff]  ;;  %v61_v60 = vld [vmem:[%s1356_s1 + $0x148] sm:$0xff]  ;;  %v47_v62 = vld [vmem:[%s1356_s1 + $0xd8] sm:$0xff]  ;;  %v750_v3 = vpack.c.bf16 %v29_v57, %v28_v56 }
   0xf   :  { %775 = vmatpush3.bf16.msra.mxu1 %v774_v38  ;;  %745 = vmatprep.subr.bf16.mxu0 %v744_v39  ;;  %v78_v1 = vld [vmem:[%s1356_s1 + $0x1d0] sm:$0xff]  ;;  %v79_v2 = vld [vmem:[%s1356_s1 + $0x1d8] sm:$0xff]  ;;  %v782_v4 = vpack.c.bf16 %v61_v60, %v60_v58  ;;  %v752_v5 = vpack.c.bf16 %v47_v62, %v46_v61  ;;  %v48_v11 = vld [vmem:[%s1356_s1 + $0xe0] sm:$0xff] }
  0x10   :  { %777 = vmatprep.subr.bf16.mxu1 %v776_v43  ;;  %v30_v6 = vld [vmem:[%s1356_s1 + $0x50] sm:$0xff]  ;;  %v31_v7 = vld [vmem:[%s1356_s1 + $0x58] sm:$0xff]  ;;  %v784_v9 = vpack.c.bf16 %v79_v2, %v78_v1  ;;  %v49_v12 = vld [vmem:[%s1356_s1 + $0xe8] sm:$0xff] }
  0x11   :  { %v62_v8 = vld [vmem:[%s1356_s1 + $0x150] sm:$0xff]  ;;  %v63_v10 = vld [vmem:[%s1356_s1 + $0x158] sm:$0xff]  ;;  %v80_v14 = vld [vmem:[%s1356_s1 + $0x1e0] sm:$0xff]  ;;  %v754_v16 = vpack.c.bf16 %v31_v7, %v30_v6  ;;  %v756_v19 = vpack.c.bf16 %v49_v12, %v48_v11 }
  0x12   :  { %747 = vmatpush3.bf16.msra.mxu0 %v746_v53  ;;  %v81_v15 = vld [vmem:[%s1356_s1 + $0x1e8] sm:$0xff]  ;;  %v32_v17 = vld [vmem:[%s1356_s1 + $0x60] sm:$0xff]  ;;  %v786_v18 = vpack.c.bf16 %v63_v10, %v62_v8  ;;  %v50_v25 = vld [vmem:[%s1356_s1 + $0xf0] sm:$0xff] }
  0x13   :  { %779 = vmatpush3.bf16.msra.mxu1 %v778_v54  ;;  %749 = vmatprep.subr.bf16.mxu0 %v748_v55  ;;  %v33_v20 = vld [vmem:[%s1356_s1 + $0x68] sm:$0xff]  ;;  %v64_v21 = vld [vmem:[%s1356_s1 + $0x160] sm:$0xff]  ;;  %v788_v23 = vpack.c.bf16 %v81_v15, %v80_v14  ;;  %v51_v26 = vld [vmem:[%s1356_s1 + $0xf8] sm:$0xff] }
  0x14   :  { %781 = vmatprep.subr.bf16.mxu1 %v780_v59  ;;  %v18_v22 = vld [vmem:[%s1355_s0] sm:$0xff]  ;;  %v65_v24 = vld [vmem:[%s1356_s1 + $0x168] sm:$0xff]  ;;  %v82_v29 = vld [vmem:[%s1356_s1 + $0x1f0] sm:$0xff]  ;;  %v758_v31 = vpack.c.bf16 %v33_v20, %v32_v17  ;;  %v760_v35 = vpack.c.bf16 %v51_v26, %v50_v25 }
  0x15   :  { %v157_v27 = vrot.slane %v18_v22, %v1077_v13  ;;  %v150_v28 = vcombine.high %v18_v22, %v18_v22  ;;  %v83_v30 = vld [vmem:[%s1356_s1 + $0x1f8] sm:$0xff]  ;;  %v790_v34 = vpack.c.bf16 %v65_v24, %v64_v21  ;;  %v34_v36 = vld [vmem:[%s1356_s1 + $0x70] sm:$0xff]  ;;  %v100_v42 = vld [vmem:[%s1356_s1 + $0x280] sm:$0xff] }
  0x16   :  { %751 = vmatpush3.bf16.msra.mxu0 %v750_v3  ;;  %v35_v37 = vld [vmem:[%s1356_s1 + $0x78] sm:$0xff]  ;;  %v66_v38 = vld [vmem:[%s1356_s1 + $0x170] sm:$0xff]  ;;  %v792_v39 = vpack.c.bf16 %v83_v30, %v82_v29  ;;  %v101_v43 = vld [vmem:[%s1356_s1 + $0x288] sm:$0xff] }
  0x17   :  { %783 = vmatpush3.bf16.msra.mxu1 %v782_v4  ;;  %753 = vmatprep.subr.bf16.mxu0 %v752_v5  ;;  %v165_v32 = vcombine.high %v157_v27, %v157_v27  ;;  %v164_v33 = vrot.slane %v150_v28, %v1077_v13  ;;  %v67_v40 = vld [vmem:[%s1356_s1 + $0x178] sm:$0xff]  ;;  %v132_v44 = vld [vmem:[%s1356_s1 + $0x380] sm:$0xff]  ;;  %v133_v45 = vld [vmem:[%s1356_s1 + $0x388] sm:$0xff]  ;;  %v762_v46 = vpack.c.bf16 %v35_v37, %v34_v36 }
  0x18   :  { %785 = vmatprep.subr.bf16.mxu1 %v784_v9  ;;  %v794_v47 = vpack.c.bf16 %v67_v40, %v66_v38  ;;  %v796_v48 = vpack.c.bf16 %v101_v43, %v100_v42  ;;  %v84_v49 = vld [vmem:[%s1356_s1 + $0x200] sm:$0xff]  ;;  %v85_v50 = vld [vmem:[%s1356_s1 + $0x208] sm:$0xff]  ;;  %v828_v52 = vpack.c.bf16 %v133_v45, %v132_v44  ;;  %v102_v54 = vld [vmem:[%s1356_s1 + $0x290] sm:$0xff] }
  0x19   :  { %256 = vmatprep.mubr.f32.mxu0 %v165_v32  ;;  %v166_v41 = vcombine.high %v164_v33, %v164_v33  ;;  %v116_v51 = vld [vmem:[%s1356_s1 + $0x300] sm:$0xff]  ;;  %v117_v53 = vld [vmem:[%s1356_s1 + $0x308] sm:$0xff]  ;;  %v103_v55 = vld [vmem:[%s1356_s1 + $0x298] sm:$0xff]  ;;  %v798_v58 = vpack.c.bf16 %v85_v50, %v84_v49 }
  0x1a   :  { %755 = vmatpush3.bf16.msra.mxu0 %v754_v16  ;;  %v134_v56 = vld [vmem:[%s1356_s1 + $0x390] sm:$0xff]  ;;  %v135_v57 = vld [vmem:[%s1356_s1 + $0x398] sm:$0xff]  ;;  %v830_v59 = vpack.c.bf16 %v117_v53, %v116_v51  ;;  %v800_v60 = vpack.c.bf16 %v103_v55, %v102_v54  ;;  %v104_v2 = vld [vmem:[%s1356_s1 + $0x2a0] sm:$0xff] }
  0x1b   :  { %787 = vmatpush3.bf16.msra.mxu1 %v786_v18  ;;  %757 = vmatprep.subr.bf16.mxu0 %v756_v19  ;;  %v86_v61 = vld [vmem:[%s1356_s1 + $0x210] sm:$0xff]  ;;  %v87_v62 = vld [vmem:[%s1356_s1 + $0x218] sm:$0xff]  ;;  %v832_v0 = vpack.c.bf16 %v135_v57, %v134_v56  ;;  %v105_v3 = vld [vmem:[%s1356_s1 + $0x2a8] sm:$0xff] }
  0x1c   :  { %789 = vmatprep.subr.bf16.mxu1 %v788_v23  ;;  %326 = vmatprep.mubr.f32.mxu1 %v166_v41  ;;  %v118_v63 = vld [vmem:[%s1356_s1 + $0x310] sm:$0xff]  ;;  %v119_v1 = vld [vmem:[%s1356_s1 + $0x318] sm:$0xff]  ;;  %v136_v4 = vld [vmem:[%s1356_s1 + $0x3a0] sm:$0xff]  ;;  %v802_v6 = vpack.c.bf16 %v87_v62, %v86_v61  ;;  %v804_v8 = vpack.c.bf16 %v105_v3, %v104_v2 }
  0x1d   :  { %v137_v5 = vld [vmem:[%s1356_s1 + $0x3a8] sm:$0xff]  ;;  %v834_v7 = vpack.c.bf16 %v119_v1, %v118_v63  ;;  %v88_v9 = vld [vmem:[%s1356_s1 + $0x220] sm:$0xff]  ;;  %v106_v15 = vld [vmem:[%s1356_s1 + $0x2b0] sm:$0xff] }
  0x1e   :  { %759 = vmatpush3.bf16.msra.mxu0 %v758_v31  ;;  %v89_v10 = vld [vmem:[%s1356_s1 + $0x228] sm:$0xff]  ;;  %v120_v11 = vld [vmem:[%s1356_s1 + $0x320] sm:$0xff]  ;;  %v836_v12 = vpack.c.bf16 %v137_v5, %v136_v4  ;;  %v107_v16 = vld [vmem:[%s1356_s1 + $0x2b8] sm:$0xff] }
  0x1f   :  { %791 = vmatpush3.bf16.msra.mxu1 %v790_v34  ;;  %761 = vmatprep.subr.bf16.mxu0 %v760_v35  ;;  %v121_v14 = vld [vmem:[%s1356_s1 + $0x328] sm:$0xff]  ;;  %v138_v17 = vld [vmem:[%s1356_s1 + $0x3b0] sm:$0xff]  ;;  %v139_v18 = vld [vmem:[%s1356_s1 + $0x3b8] sm:$0xff]  ;;  %v806_v19 = vpack.c.bf16 %v89_v10, %v88_v9  ;;  %v808_v22 = vpack.c.bf16 %v107_v16, %v106_v15 }
  0x20   :  { %793 = vmatprep.subr.bf16.mxu1 %v792_v39  ;;  %v90_v20 = vld [vmem:[%s1356_s1 + $0x230] sm:$0xff]  ;;  %v838_v21 = vpack.c.bf16 %v121_v14, %v120_v11  ;;  %v91_v23 = vld [vmem:[%s1356_s1 + $0x238] sm:$0xff]  ;;  %v840_v26 = vpack.c.bf16 %v139_v18, %v138_v17  ;;  %v109_v28 = vld [vmem:[%s1356_s1 + $0x2c8] sm:$0xff] }
  0x21   :  { %v122_v24 = vld [vmem:[%s1356_s1 + $0x330] sm:$0xff]  ;;  %v123_v25 = vld [vmem:[%s1356_s1 + $0x338] sm:$0xff]  ;;  %v140_v29 = vld [vmem:[%s1356_s1 + $0x3c0] sm:$0xff] }
  0x22   :  { %763 = vmatpush3.bf16.msra.mxu0 %v762_v46  ;;  %v141_v30 = vld [vmem:[%s1356_s1 + $0x3c8] sm:$0xff] }
  0x23   :  { %795 = vmatpush3.bf16.msra.mxu1 %v794_v47  ;;  %797 = vmatprep.subr.bf16.mxu0 %v796_v48  ;;  %v19_v31 = vld [vmem:[%s1355_s0 + $0x8] sm:$0xff] }
  0x24   :  { %829 = vmatprep.subr.bf16.mxu1 %v828_v52 }
  0x25   :  { %257 = vmatmul.mubr.f32.vlgmr.msra.gmra.mrb[0].mxu0 %v157_v27  ;;  %v108_v27 = vld [vmem:[%s1356_s1 + $0x2c0] sm:$0xff] }
  0x26   :  { %327 = vmatmul.mubr.f32.vlgmr.msra.gmra.mrb[0].mxu1 %v164_v33  ;;  %799 = vmatpush3.bf16.msra.mxu0 %v798_v58 }
  0x27   :  { %831 = vmatpush3.bf16.msra.mxu1 %v830_v59  ;;  %801 = vmatprep.subr.bf16.mxu0 %v800_v60 }
  0x28   :  { %833 = vmatprep.subr.bf16.mxu1 %v832_v0 }
  0x2a   :  { %803 = vmatpush3.bf16.msra.mxu0 %v802_v6 }
  0x2b   :  { %835 = vmatpush3.bf16.msra.mxu1 %v834_v7  ;;  %805 = vmatprep.subr.bf16.mxu0 %v804_v8 }
  0x2c   :  { %837 = vmatprep.subr.bf16.mxu1 %v836_v12 }
  0x2d   :  { %9 = vsyncpa [#allocation3], 0  ;;  %v810_v32 = vpack.c.bf16 %v91_v23, %v90_v20  ;;  %v1238_v33 = vrot.slane %v19_v31, %v1077_v13  ;;  %v167_v34 = vcombine.high %v19_v31, %v19_v31  ;;  %v842_v35 = vpack.c.bf16 %v123_v25, %v122_v24  ;;  %v92_v37 = vld [vmem:[%s1356_s1 + $0x240] sm:$0xff]  ;;  %v93_v38 = vld [vmem:[%s1356_s1 + $0x248] sm:$0xff]  ;;  %s901_s20 = smov [#allocation2]  }
  0x2e   :  { %807 = vmatpush3.bf16.msra.mxu0 %v806_v19  ;;  %v812_v36 = vpack.c.bf16 %v109_v28, %v108_v27  ;;  %v124_v39 = vld [vmem:[%s1356_s1 + $0x340] sm:$0xff]  ;;  %v844_v40 = vpack.c.bf16 %v141_v30, %v140_v29  ;;  %v125_v41 = vld [vmem:[%s1356_s1 + $0x348] sm:$0xff]  ;;  %v110_v42 = vld [vmem:[%s1356_s1 + $0x2d0] sm:$0xff]  ;;  %v814_v48 = vpack.c.bf16 %v93_v38, %v92_v37  ;;  %vm899_vm0 = vmmov 0   ;;  %s566_s21 = sshll.u32 %s901_s20, 4  ;;  %s567_s21 = int_to_ptr.vmem [resolvable:$true] %s566_s21 }
  0x2f   :  { %839 = vmatpush3.bf16.msra.mxu1 %v838_v21  ;;  %809 = vmatprep.subr.bf16.mxu0 %v808_v22  ;;  %v111_v43 = vld [vmem:[%s1356_s1 + $0x2d8] sm:$0xff]  ;;  %v182_v44 = vcombine.high %v1238_v33, %v1238_v33  ;;  %v181_v45 = vrot.slane %v167_v34, %v1077_v13  ;;  %v142_v46 = vld [vmem:[%s1356_s1 + $0x3d0] sm:$0xff]  ;;  %v846_v50 = vpack.c.bf16 %v125_v41, %v124_v39  ;;  %v112_v56 = vld [vmem:[%s1356_s1 + $0x2e0] sm:$0xff]  ;;  %v898_v22 = vmov 0.0|0.0   ;;  %s873_s22 = scalar_lea.vmem %s567_s21, 32  ;;  %p878_p1 = scmp.lt.s32.totalorder %s567_s21, %s567_s21 }
  0x30   :  { %841 = vmatprep.subr.bf16.mxu1 %v840_v26  ;;  %v143_v47 = vld [vmem:[%s1356_s1 + $0x3d8] sm:$0xff]  ;;  %v816_v51 = vpack.c.bf16 %v111_v43, %v110_v42  ;;  %v94_v13 = vld [vmem:[%s1356_s1 + $0x250] sm:$0xff]  ;;  %v113_v57 = vld [vmem:[%s1356_s1 + $0x2e8] sm:$0xff]  ;;  %v900_v26 = vmov 0.0   ;;  %vm484_vm1 = vcmask 261120   ;;  %vm558_vm2 = vcmask 123904   ;;  %p874_p0 = scmp.ne.s32.totalorder %s567_s21, %s873_s22  ;;  %p879_p2 = scmp.lt.s32.totalorder %s873_s22, %s873_s22 }
  0x31   :  { %396 = vmatprep.mubr.f32.mxu0 %v182_v44  ;;  %v183_v49 = vcombine.high %v181_v45, %v181_v45  ;;  %v95_v52 = vld [vmem:[%s1356_s1 + $0x258] sm:$0xff]  ;;  %v126_v53 = vld [vmem:[%s1356_s1 + $0x350] sm:$0xff]  ;;  %v848_v54 = vpack.c.bf16 %v143_v47, %v142_v46  ;;  %v144_v58 = vld [vmem:[%s1356_s1 + $0x3e0] sm:$0xff]  ;;  %v820_v62 = vpack.c.bf16 %v113_v57, %v112_v56 }
  0x32   :  { %811 = vmatpush3.bf16.msra.mxu0 %v810_v32  ;;  %v127_v55 = vld [vmem:[%s1356_s1 + $0x358] sm:$0xff]  ;;  %v145_v59 = vld [vmem:[%s1356_s1 + $0x3e8] sm:$0xff]  ;;  %v818_v60 = vpack.c.bf16 %v95_v52, %v94_v13  ;;  %v96_v63 = vld [vmem:[%s1356_s1 + $0x260] sm:$0xff]  ;;  %p880_p3 = por %p879_p2, %p878_p1 }
  0x33   :  { %843 = vmatpush3.bf16.msra.mxu1 %v842_v35  ;;  %813 = vmatprep.subr.bf16.mxu0 %v812_v36  ;;  %v850_v61 = vpack.c.bf16 %v127_v55, %v126_v53  ;;  %v97_v0 = vld [vmem:[%s1356_s1 + $0x268] sm:$0xff]  ;;  %v128_v1 = vld [vmem:[%s1356_s1 + $0x360] sm:$0xff]  ;;  %v852_v2 = vpack.c.bf16 %v145_v59, %v144_v58  ;;  %v114_v4 = vld [vmem:[%s1356_s1 + $0x2f0] sm:$0xff] }
  0x34   :  { %845 = vmatprep.subr.bf16.mxu1 %v844_v40  ;;  %466 = vmatprep.mubr.f32.mxu1 %v183_v49  ;;  %v129_v3 = vld [vmem:[%s1356_s1 + $0x368] sm:$0xff]  ;;  %v115_v5 = vld [vmem:[%s1356_s1 + $0x2f8] sm:$0xff]  ;;  %v146_v6 = vld [vmem:[%s1356_s1 + $0x3f0] sm:$0xff]  ;;  %v822_v8 = vpack.c.bf16 %v97_v0, %v96_v63  ;;  %p881_p4 = pnand %p880_p3, %p874_p0 }
  0x35   :  { %v147_v7 = vld [vmem:[%s1356_s1 + $0x3f8] sm:$0xff]  ;;  %v854_v9 = vpack.c.bf16 %v129_v3, %v128_v1  ;;  %v824_v10 = vpack.c.bf16 %v115_v5, %v114_v4  ;;  %v98_v11 = vld [vmem:[%s1356_s1 + $0x270] sm:$0xff]  ;;  %v473_v19 = vld [vmem:[%s1357_s2] sm:$0xff] }
  0x36   :  { %815 = vmatpush3.bf16.msra.mxu0 %v814_v48  ;;  %v99_v12 = vld [vmem:[%s1356_s1 + $0x278] sm:$0xff]  ;;  %v856_v14 = vpack.c.bf16 %v147_v7, %v146_v6  ;;  %v130_v15 = vld [vmem:[%s1356_s1 + $0x370] sm:$0xff]  ;;  %v474_v20 = vld [vmem:[%s1357_s2 + $0x8] sm:$0xff] }
  0x37   :  { %847 = vmatpush3.bf16.msra.mxu1 %v846_v50  ;;  %817 = vmatprep.subr.bf16.mxu0 %v816_v51  ;;  %v131_v16 = vld [vmem:[%s1356_s1 + $0x378] sm:$0xff]  ;;  %v826_v17 = vpack.c.bf16 %v99_v12, %v98_v11  ;;  %v861_v21 = vpack.c.bf16 %v474_v20, %v473_v19  ;;  %v475_v23 = vld [vmem:[%s1357_s2 + $0x10] sm:$0xff]  ;;  %v574_v43 = vld [vmem:[%s1358_s3] ss:$0 sm:$0xff] }
  0x38   :  { %849 = vmatprep.subr.bf16.mxu1 %v848_v54  ;;  %v858_v18 = vpack.c.bf16 %v131_v16, %v130_v15  ;;  %v476_v24 = vld [vmem:[%s1357_s2 + $0x18] sm:$0xff] }
  0x39   :  { %v864_v25 = vpack.c.bf16 %v476_v24, %v475_v23 }
  0x3a   :  { %819 = vmatpush3.bf16.msra.mxu0 %v818_v60 }
  0x3b   :  { %851 = vmatpush3.bf16.msra.mxu1 %v850_v61  ;;  %821 = vmatprep.subr.bf16.mxu0 %v820_v62 }
  0x3c   :  { %853 = vmatprep.subr.bf16.mxu1 %v852_v2 }
  0x3e   :  { %823 = vmatpush3.bf16.msra.mxu0 %v822_v8 }
  0x3f   :  { %855 = vmatpush3.bf16.msra.mxu1 %v854_v9  ;;  %825 = vmatprep.subr.bf16.mxu0 %v824_v10 }
  0x40   :  { %857 = vmatprep.subr.bf16.mxu1 %v856_v14 }
  0x42   :  { %827 = vmatpush3.bf16.msra.mxu0 %v826_v17 }
  0x43   :  { %859 = vmatpush3.bf16.msra.mxu1 %v858_v18  ;;  %860 = vmatprep.subr.bf16.mxu0 %v898_v22 }
  0x45   :  { %397 = vmatmul.mubr.f32.vlgmr.msra.gmra.mrb[2].mxu0 %v1238_v33 }
  0x46   :  { %467 = vmatmul.mubr.f32.vlgmr.msra.gmra.mrb[2].mxu1 %v181_v45  ;;  %862 = vmatpush3.bf16.msra.mxu0 %v861_v21 }
  0x47   :  { %863 = vmatprep.subr.bf16.mxu0 %v898_v22  ;;  %729 = vmatprep.mubr.msk.f32.mxu0 %vm899_vm0, %v900_v26 }
  0x4a   :  { %865 = vmatpush3.bf16.msra.mxu0 %v864_v25 }
  0xf8   :  { %v608_v27 = vpop.f32.mrb[0].mxu0 }
  0xf9   :  { %v643_v28 = vpop.f32.mrb[0].mxu1  ;;  %v609_v29 = vpop.f32.mrb[1].mxu0 }
  0xfa   :  { %v610_v30 = vadd.f32 %v609_v29, %v608_v27  ;;  %v644_v31 = vpop.f32.mrb[1].mxu1 }
  0xfb   :  { %v645_v32 = vadd.f32 %v644_v31, %v643_v28 }
  0xfd   :  { %v329_v33 = vadd.f32 %v645_v32, %v610_v30 }
 0x118   :  { %v678_v34 = vpop.f32.mrb[2].mxu0 }
 0x119   :  { %v679_v35 = vpop.f32.mrb[3].mxu0  ;;  %v713_v36 = vpop.f32.mrb[2].mxu1 }
 0x11a   :  { %v680_v37 = vadd.f32 %v679_v35, %v678_v34  ;;  %v714_v38 = vpop.f32.mrb[3].mxu1 }
 0x11b   :  { %v715_v39 = vadd.f32 %v714_v38, %v713_v36 }
 0x11c   :  { %v399_v40 = vadd.f32 %v680_v37, %v329_v33 }
 0x11e   :  { %v469_v41 = vadd.f32 %v715_v39, %v399_v40 }
 0x120   :  { %v472_v42 = vmax.f32 %v469_v41, 0.0 }
 0x122   :  { %730 = vmatmul.mubr.msk.f32.vlgmr.msra.gmra.mrb[4].mxu0 %vm484_vm1, %v472_v42 }
 0x1f5   :  { %v554_v44 = vpop.f32.mrb[4].mxu0 }
 0x1f6   :  { %v555_v45 = vadd.f32 %v574_v43, %v554_v44  ;;  %v731_v46 = vpop.f32.mrb[5].mxu0 }
 0x1f8   :  { %559 = vst.msk [vmem:[#allocation2] sm:$0x3] %vm558_vm2, %v555_v45 }
 0x1f9   :  { %884 = shalt.err (!%p881_p4)
}
 0x1fa   :  { %s885_s25 = scalar_lea.hbm %s1359_s4, 32 }
 0x1fb   :  { %p886_p5 = scmp.ne.s32.totalorder %s1359_s4, %s885_s25  ;;  %p889_p6 = scmp.lt.u32.totalorder %s885_s25, %s1359_s4 }
 0x1fd   :  { %p891_p7 = pnand %p889_p6, %p886_p5 }
 0x1ff   :  { %894 = shalt.err (!%p891_p7)
}
 0x200   :  { %569 = dma.vmem_to_hbm [thread:$0]  %s567_s21, 32, %s1359_s4, [#allocation3]  }
 0x201   :  { %895 = dma.done.wait [#allocation3], 32  }
 0x202   :  { %896 = vsyncadd [#allocation3], 4294967264 }
 0x203   :  { %573 = vsyncpa [#allocation3], 1 }

</bundles_post_ra>
